<compile_context>
chip_gen: v6e
topology: v6e:2x2x1
jax: 0.10.0
libtpu: 0.0.40
codegen_flags: <defaults>
</compile_context>

<pallas_src>
import functools

import jax
import jax.numpy as jnp
from jax.experimental import pallas as pl
from jax.experimental.pallas import tpu as pltpu


_MASK_PENALTY = 1e9


def _round_up(x, m):
    return ((x + m - 1) // m) * m


def _tpu_hw_info():
    """Returns (vmem_capacity_bytes, has_two_tensorcores) with safe fallbacks."""
    vmem = None
    try:
        info = pltpu.get_tpu_info()
        vmem = int(getattr(info, "vmem_capacity_bytes"))
    except Exception:
        vmem = None
    kind = ""
    try:
        kind = jax.devices()[0].device_kind.lower()
    except Exception:
        pass
    if vmem is None:
        # v5e/v6e: 128 MiB per TensorCore; v7x: 64 MiB.  Unknown -> be
        # conservative (v7x-safe).
        vmem = (128 << 20) if ("v5" in kind or "v6" in kind) else (64 << 20)
    two_tc = ("7x" in kind) or ("v7" in kind)
    return vmem, two_tc


def _mlp_kernel(n_layers, activation, has_mask, *refs):
    """Kernel body.

    refs = (x_ref, w0, b0, ..., w_{L-1}, b_{L-1}[, mask_ref], out_ref)
    Hidden layers get the activation; final layer is linear; optional mask
    penalty (mask - 1) * 1e9 is added at the end (all epilogue math in fp32).
    """
    x_ref = refs[0]
    out_ref = refs[-1]
    mask_ref = refs[-2] if has_mask else None

    h = x_ref[...]
    for l in range(n_layers):
        w_ref = refs[1 + 2 * l]
        b_ref = refs[2 + 2 * l]
        # bf16 x bf16 -> fp32 accumulation on the MXU.
        h = jnp.dot(h.astype(w_ref.dtype), w_ref[...],
                    preferred_element_type=jnp.float32)
        h = h + b_ref[...].astype(jnp.float32)
        if l < n_layers - 1:  # activation only on hidden layers
            h = jnp.tanh(h) if activation == "tanh" else jnp.maximum(h, 0.0)

    if has_mask:
        h = h + (mask_ref[...].astype(jnp.float32) - 1.0) * _MASK_PENALTY

    out_ref[...] = h.astype(out_ref.dtype)


def init_ppo_actor_params(key, input_dim, output_dim, hidden_dims,
                          w_dtype=jnp.bfloat16, pad_out_to_lanes=True):
    """Xavier-uniform weights (stored [in, out]), zero biases (fp32).

    With pad_out_to_lanes=True the last layer is zero-padded to a multiple of
    128 output columns at init time (lane-dense stores, no per-call pad pass);
    pass the real `out_dim` to ppo_actor_forward in that case.
    """
    dims = [input_dim] + list(hidden_dims) + [output_dim]
    params = []
    for i in range(len(dims) - 1):
        fan_in, fan_out = dims[i], dims[i + 1]
        key, sub = jax.random.split(key)
        limit = (6.0 / (fan_in + fan_out)) ** 0.5
        w = jax.random.uniform(sub, (fan_in, fan_out), jnp.float32,
                               -limit, limit).astype(w_dtype)
        b = jnp.zeros((1, fan_out), jnp.float32)
        if pad_out_to_lanes and i == len(dims) - 2:
            fan_out_pad = _round_up(fan_out, 128)
            if fan_out_pad != fan_out:
                w = jnp.pad(w, ((0, 0), (0, fan_out_pad - fan_out)))
                b = jnp.pad(b, ((0, 0), (0, fan_out_pad - fan_out)))
        params.append((w, b))
    return params


def ppo_actor_forward(x, params, mask=None, activation="relu", out_dim=None,
                      max_tile_b=1024, out_store_dtype=jnp.bfloat16):
    """Forward pass of PPOActorNetwork via one Pallas kernel.

    x:      [B, input_dim] float32 or bfloat16
    params: list of (W [in, out] bf16/fp32, b [1, out] fp32); the last layer
            may be pre-padded to a multiple of 128 columns (pass out_dim).
    mask:   optional [B, out_dim]; logits += (mask - 1) * 1e9
    """
    B, input_dim = x.shape
    n_layers = len(params)
    has_mask = mask is not None

    w_last, b_last = params[-1]
    last_cols = w_last.shape[1]
    if out_dim is None:
        out_dim = last_cols

    # ---- Lane-dense output: final layer spans a multiple of 128 columns.
    out_pad = _round_up(out_dim, 128)
    if last_cols == out_pad:
        kparams = list(params)                        # pre-padded at init
    elif last_cols == out_dim:
        w_last = jnp.pad(w_last, ((0, 0), (0, out_pad - out_dim)))
        b_last = jnp.pad(b_last, ((0, 0), (0, out_pad - out_dim)))
        kparams = list(params[:-1]) + [(w_last, b_last)]
    else:
        raise ValueError(
            f"last layer has {last_cols} cols; expected {out_dim} or {out_pad}")

    # ---- Generation-aware VMEM budget & batch-tile sizing.
    vmem_cap, two_tc = _tpu_hw_info()
    vmem_budget = int(0.75 * vmem_cap)

    itemsize = lambda a: jnp.dtype(a.dtype).itemsize
    # Weights are single-buffered (pl.Buffered(1)) -> 1x resident bytes.
    w_bytes = sum(w.size * itemsize(w) + b.size * itemsize(b)
                  for w, b in kparams)

    mask_kdtype = jnp.bfloat16  # narrow mask stream; fp32 math in-kernel
    x_row = input_dim * itemsize(x)
    out_row = out_pad * jnp.dtype(out_store_dtype).itemsize
    mask_row = out_pad * jnp.dtype(mask_kdtype).itemsize if has_mask else 0
    widest = max([input_dim, out_pad] + [w.shape[1] for w, _ in kparams])
    # Live intermediates: fp32 h + fp32 matmul result + bf16 cast copy,
    # plus a 15% margin for Mosaic internal scratch.
    interm_row = (4 + 4 + 2) * widest
    per_row_bytes = int(1.15 * (2 * x_row + 2 * out_row + 2 * mask_row
                                + interm_row))

    # 16-row alignment keeps sub-32-bit per-row streams (bf16 x/mask/out) on
    # sublane-packing boundaries; also valid for pure-f32 streams.
    row_align = 16
    budget_rows = max((vmem_budget - w_bytes) // per_row_bytes, row_align)
    tile_b = min(max_tile_b, _round_up(B, row_align),
                 (budget_rows // row_align) * row_align)
    if two_tc and _round_up(B, row_align) >= 512:
        # Only on 2-TensorCore chips (v7x) with enough work per core: keep
        # >= 2 grid steps so the batch can shard across both cores.
        tile_b = min(tile_b, _round_up(-(-B // 2), row_align))
    tile_b = max(tile_b, row_align)

    # ---- Pad the batch to the tile boundary (zero rows; sliced off below).
    B_pad = _round_up(B, tile_b)
    x_p = x if B_pad == B else jnp.pad(x, ((0, B_pad - B), (0, 0)))
    grid = (B_pad // tile_b,)

    const_map = lambda i: (0, 0)
    in_specs = [pl.BlockSpec((tile_b, input_dim), lambda i: (i, 0))]
    flat_args = [x_p]
    for (w, b) in kparams:
        # Grid-invariant and single-buffered: DMA'd once, resident all grid.
        in_specs.append(pl.BlockSpec(w.shape, const_map,
                                     pipeline_mode=pl.Buffered(1)))
        in_specs.append(pl.BlockSpec(b.shape, const_map,
                                     pipeline_mode=pl.Buffered(1)))
        flat_args += [w, b]

    if has_mask:
        m_p = jnp.pad(mask.astype(mask_kdtype),
                      ((0, B_pad - B), (0, out_pad - out_dim)),
                      constant_values=1.0)  # 1.0 -> zero penalty on padding
        in_specs.append(pl.BlockSpec((tile_b, out_pad), lambda i: (i, 0)))
        flat_args.append(m_p)

    out_specs = pl.BlockSpec((tile_b, out_pad), lambda i: (i, 0))

    # ---- Cost estimate so XLA can schedule neighbours around this short call.
    layer_dims = [(w.shape[0], w.shape[1]) for w, _ in kparams]
    flops = 2 * B_pad * sum(k * n for k, n in layer_dims)
    transcendentals = (B_pad * sum(n for _, n in layer_dims[:-1])
                       if activation == "tanh" else 0)
    bytes_accessed = (x_p.size * itemsize(x_p) + w_bytes
                      + B_pad * out_pad * jnp.dtype(out_store_dtype).itemsize
                      + (m_p.size * jnp.dtype(mask_kdtype).itemsize
                         if has_mask else 0))
    cost = pl.CostEstimate(flops=int(flops),
                           transcendentals=int(transcendentals),
                           bytes_accessed=int(bytes_accessed))

    vmem_limit = w_bytes + tile_b * per_row_bytes + (4 << 20)
    vmem_limit = int(min(max(vmem_limit, 16 << 20), int(0.9 * vmem_cap)))

    kernel = functools.partial(_mlp_kernel, n_layers, activation, has_mask)

    out = pl.pallas_call(
        kernel,
        out_shape=jax.ShapeDtypeStruct((B_pad, out_pad), out_store_dtype),
        grid=grid,
        in_specs=in_specs,
        out_specs=out_specs,
        compiler_params=pltpu.CompilerParams(
            dimension_semantics=("parallel",),
            vmem_limit_bytes=vmem_limit,
        ),
        cost_estimate=cost,
    )(*flat_args)

    return out[:B, :out_dim].astype(jnp.float32)


def ppo_actor_reference(x, params, mask=None, activation="relu", out_dim=None):
    """Pure-JAX reference matching the kernel's bf16-matmul / fp32-epilogue."""
    if out_dim is None:
        out_dim = params[-1][0].shape[1]
    h = x.astype(jnp.float32)
    for l, (w, b) in enumerate(params):
        h = jnp.dot(h.astype(w.dtype), w, preferred_element_type=jnp.float32)
        h = h + b.astype(jnp.float32)
        if l < len(params) - 1:
            h = jnp.tanh(h) if activation == "tanh" else jnp.maximum(h, 0.0)
    h = h[:, :out_dim]
    if mask is not None:
        h = h + (mask.astype(jnp.float32) - 1.0) * _MASK_PENALTY
    return h


# TODO(synk): train-mode dropout (nn.Dropout with p>0) is not implemented; this
# kernel covers the inference / dropout=0 forward path of the module.


if __name__ == "__main__":
    # Small shapes consistent with the module: batch=8, input_dim=32,
    # hidden_dims=[64, 32], output_dim=16.
    key = jax.random.PRNGKey(0)
    k_params, k_x, k_mask, k_x2 = jax.random.split(key, 4)

    input_dim, output_dim, hidden_dims = 32, 16, [64, 32]
    B = 8

    # Last layer pre-padded to 128 lanes at init (no per-call pad pass).
    params = init_ppo_actor_params(k_params, input_dim, output_dim, hidden_dims)
    x = jax.random.normal(k_x, (B, input_dim), jnp.float32)
    # Binary action mask (1 = allowed, 0 = masked out).
    mask = (jax.random.uniform(k_mask, (B, output_dim)) > 0.3).astype(jnp.float32)

    logits = jax.block_until_ready(
        ppo_actor_forward(x, params, mask=mask, activation="relu",
                          out_dim=output_dim))
    ref = ppo_actor_reference(x, params, mask=mask, activation="relu",
                              out_dim=output_dim)
    assert logits.shape == (B, output_dim)
    assert jnp.allclose(logits, ref, atol=3e-2, rtol=3e-2), "mismatch (masked)"

    # mask=None path with bf16 inputs and a batch that is not a multiple of
    # the row alignment — exercises tail padding and the bf16 input stream.
    x2 = jax.random.normal(k_x2, (5, input_dim), jnp.float32).astype(jnp.bfloat16)
    logits2 = jax.block_until_ready(
        ppo_actor_forward(x2, params, mask=None, out_dim=output_dim))
    ref2 = ppo_actor_reference(x2, params, mask=None, out_dim=output_dim)
    assert logits2.shape == (5, output_dim)
    assert jnp.allclose(logits2, ref2, atol=3e-2, rtol=3e-2), "mismatch (no mask)"

    print("KERNEL_OK")
</pallas_src>

<mosaic_0001>
module attributes {stable_mosaic.version = 11 : i64} {
  func.func @_mlp_kernel(%arg0: i32, %arg1: memref<16x32xf32, #tpu.memory_space<vmem>>, %arg2: memref<32x64xbf16, #tpu.memory_space<vmem>>, %arg3: memref<1x64xf32, #tpu.memory_space<vmem>>, %arg4: memref<64x32xbf16, #tpu.memory_space<vmem>>, %arg5: memref<1x32xf32, #tpu.memory_space<vmem>>, %arg6: memref<32x128xbf16, #tpu.memory_space<vmem>>, %arg7: memref<1x128xf32, #tpu.memory_space<vmem>>, %arg8: memref<16x128xbf16, #tpu.memory_space<vmem>>, %arg9: memref<16x128xbf16, #tpu.memory_space<vmem>>) attributes {dimension_semantics = [#tpu.dimension_semantics<parallel>], iteration_bounds = array<i64: 1>, scalar_prefetch = 0 : i64, scratch_operands = 0 : i64, tpu.core_type = #tpu.core_type<tc>, window_params = [{transform_indices = @transform_0, window_bounds = array<i64: 16, 32>}, {pipeline_mode = #tpu.pipeline_mode<synchronous>, transform_indices = @transform_1, window_bounds = array<i64: 32, 64>}, {pipeline_mode = #tpu.pipeline_mode<synchronous>, transform_indices = @transform_2, window_bounds = array<i64: 1, 64>}, {pipeline_mode = #tpu.pipeline_mode<synchronous>, transform_indices = @transform_3, window_bounds = array<i64: 64, 32>}, {pipeline_mode = #tpu.pipeline_mode<synchronous>, transform_indices = @transform_4, window_bounds = array<i64: 1, 32>}, {pipeline_mode = #tpu.pipeline_mode<synchronous>, transform_indices = @transform_5, window_bounds = array<i64: 32, 128>}, {pipeline_mode = #tpu.pipeline_mode<synchronous>, transform_indices = @transform_6, window_bounds = array<i64: 1, 128>}, {transform_indices = @transform_7, window_bounds = array<i64: 16, 128>}, {transform_indices = @transform_8, window_bounds = array<i64: 16, 128>}]} {
    %c0 = arith.constant 0 : index
    %c0_0 = arith.constant 0 : index
    %0 = vector.load %arg1[%c0, %c0_0] : memref<16x32xf32, #tpu.memory_space<vmem>>, vector<16x32xf32>
    %1 = arith.truncf %0 : vector<16x32xf32> to vector<16x32xbf16>
    %c0_1 = arith.constant 0 : index
    %c0_2 = arith.constant 0 : index
    %2 = vector.load %arg2[%c0_1, %c0_2] : memref<32x64xbf16, #tpu.memory_space<vmem>>, vector<32x64xbf16>
    %cst = arith.constant dense<0.000000e+00> : vector<16x64xf32>
    %3 = tpu.matmul %1, %2, %cst {dimension_numbers = #tpu.dot_dimension_numbers<[1], [0], [0], [1], [0, 0, 1, 1], [], []>} : vector<16x32xbf16>, vector<32x64xbf16>, vector<16x64xf32> -> vector<16x64xf32>
    %c0_3 = arith.constant 0 : index
    %c0_4 = arith.constant 0 : index
    %4 = vector.load %arg3[%c0_3, %c0_4] : memref<1x64xf32, #tpu.memory_space<vmem>>, vector<1x64xf32>
    %5 = vector.broadcast %4 : vector<1x64xf32> to vector<16x64xf32>
    %6 = arith.addf %3, %5 : vector<16x64xf32>
    %cst_5 = arith.constant 0.000000e+00 : f32
    %7 = vector.broadcast %cst_5 : f32 to vector<16x64xf32>
    %8 = arith.maximumf %6, %7 : vector<16x64xf32>
    %9 = arith.truncf %8 : vector<16x64xf32> to vector<16x64xbf16>
    %c0_6 = arith.constant 0 : index
    %c0_7 = arith.constant 0 : index
    %10 = vector.load %arg4[%c0_6, %c0_7] : memref<64x32xbf16, #tpu.memory_space<vmem>>, vector<64x32xbf16>
    %cst_8 = arith.constant dense<0.000000e+00> : vector<16x32xf32>
    %11 = tpu.matmul %9, %10, %cst_8 {dimension_numbers = #tpu.dot_dimension_numbers<[1], [0], [0], [1], [0, 0, 1, 1], [], []>} : vector<16x64xbf16>, vector<64x32xbf16>, vector<16x32xf32> -> vector<16x32xf32>
    %c0_9 = arith.constant 0 : index
    %c0_10 = arith.constant 0 : index
    %12 = vector.load %arg5[%c0_9, %c0_10] : memref<1x32xf32, #tpu.memory_space<vmem>>, vector<1x32xf32>
    %13 = vector.broadcast %12 : vector<1x32xf32> to vector<16x32xf32>
    %14 = arith.addf %11, %13 : vector<16x32xf32>
    %cst_11 = arith.constant 0.000000e+00 : f32
    %15 = vector.broadcast %cst_11 : f32 to vector<16x32xf32>
    %16 = arith.maximumf %14, %15 : vector<16x32xf32>
    %17 = arith.truncf %16 : vector<16x32xf32> to vector<16x32xbf16>
    %c0_12 = arith.constant 0 : index
    %c0_13 = arith.constant 0 : index
    %18 = vector.load %arg6[%c0_12, %c0_13] : memref<32x128xbf16, #tpu.memory_space<vmem>>, vector<32x128xbf16>
    %cst_14 = arith.constant dense<0.000000e+00> : vector<16x128xf32>
    %19 = tpu.matmul %17, %18, %cst_14 {dimension_numbers = #tpu.dot_dimension_numbers<[1], [0], [0], [1], [0, 0, 1, 1], [], []>} : vector<16x32xbf16>, vector<32x128xbf16>, vector<16x128xf32> -> vector<16x128xf32>
    %c0_15 = arith.constant 0 : index
    %c0_16 = arith.constant 0 : index
    %20 = vector.load %arg7[%c0_15, %c0_16] : memref<1x128xf32, #tpu.memory_space<vmem>>, vector<1x128xf32>
    %21 = vector.broadcast %20 : vector<1x128xf32> to vector<16x128xf32>
    %22 = arith.addf %19, %21 : vector<16x128xf32>
    %c0_17 = arith.constant 0 : index
    %c0_18 = arith.constant 0 : index
    %23 = vector.load %arg8[%c0_17, %c0_18] : memref<16x128xbf16, #tpu.memory_space<vmem>>, vector<16x128xbf16>
    %24 = arith.extf %23 : vector<16x128xbf16> to vector<16x128xf32>
    %cst_19 = arith.constant 1.000000e+00 : f32
    %25 = vector.broadcast %cst_19 : f32 to vector<16x128xf32>
    %26 = arith.subf %24, %25 : vector<16x128xf32>
    %cst_20 = arith.constant 1.000000e+09 : f32
    %27 = vector.broadcast %cst_20 : f32 to vector<16x128xf32>
    %28 = arith.mulf %26, %27 : vector<16x128xf32>
    %29 = arith.addf %22, %28 : vector<16x128xf32>
    %30 = arith.truncf %29 : vector<16x128xf32> to vector<16x128xbf16>
    %c0_21 = arith.constant 0 : index
    %c0_22 = arith.constant 0 : index
    %31 = vector.load %arg9[%c0_21, %c0_22] : memref<16x128xbf16, #tpu.memory_space<vmem>>, vector<16x128xbf16>
    tpu.vector_store %arg9[%c0_21, %c0_22], %30 {strides = array<i32>} : memref<16x128xbf16, #tpu.memory_space<vmem>>, vector<16x128xbf16>,
    return
  }
  func.func @transform_0(%arg0: i32) -> (i32, i32) {
    %c0_i32 = arith.constant 0 : i32
    %c0_i32_0 = arith.constant 0 : i32
    return %arg0, %c0_i32 : i32, i32
  }
  func.func @transform_1(%arg0: i32) -> (i32, i32) {
    %c0_i32 = arith.constant 0 : i32
    %c0_i32_0 = arith.constant 0 : i32
    %c0_i32_1 = arith.constant 0 : i32
    return %c0_i32, %c0_i32_0 : i32, i32
  }
  func.func @transform_2(%arg0: i32) -> (i32, i32) {
    %c0_i32 = arith.constant 0 : i32
    %c0_i32_0 = arith.constant 0 : i32
    %c0_i32_1 = arith.constant 0 : i32
    return %c0_i32, %c0_i32_0 : i32, i32
  }
  func.func @transform_3(%arg0: i32) -> (i32, i32) {
    %c0_i32 = arith.constant 0 : i32
    %c0_i32_0 = arith.constant 0 : i32
    %c0_i32_1 = arith.constant 0 : i32
    return %c0_i32, %c0_i32_0 : i32, i32
  }
  func.func @transform_4(%arg0: i32) -> (i32, i32) {
    %c0_i32 = arith.constant 0 : i32
    %c0_i32_0 = arith.constant 0 : i32
    %c0_i32_1 = arith.constant 0 : i32
    return %c0_i32, %c0_i32_0 : i32, i32
  }
  func.func @transform_5(%arg0: i32) -> (i32, i32) {
    %c0_i32 = arith.constant 0 : i32
    %c0_i32_0 = arith.constant 0 : i32
    %c0_i32_1 = arith.constant 0 : i32
    return %c0_i32, %c0_i32_0 : i32, i32
  }
  func.func @transform_6(%arg0: i32) -> (i32, i32) {
    %c0_i32 = arith.constant 0 : i32
    %c0_i32_0 = arith.constant 0 : i32
    %c0_i32_1 = arith.constant 0 : i32
    return %c0_i32, %c0_i32_0 : i32, i32
  }
  func.func @transform_7(%arg0: i32) -> (i32, i32) {
    %c0_i32 = arith.constant 0 : i32
    %c0_i32_0 = arith.constant 0 : i32
    return %arg0, %c0_i32 : i32, i32
  }
  func.func @transform_8(%arg0: i32) -> (i32, i32) {
    %c0_i32 = arith.constant 0 : i32
    %c0_i32_0 = arith.constant 0 : i32
    return %arg0, %c0_i32 : i32, i32
  }
}

</mosaic_0001>

<bundles_post_ra>
// kernel: tpu_custom_call.1
= control target key start
LH: loop header
LB: loop body
LE: loop exit
PB: predicated region body
PF: predicated region fallthrough
CT: control target
= control target key end

     0   :  { %13 = vsyncpa [#allocation3], 0  ;;  %s535_s0 = inlined_call_operand.vmem [shape: f32[16,32], index: 0, kind: input, shape index: {}]   ;;  %s536_s1 = inlined_call_operand.vmem [shape: bf16[32,64], index: 1, kind: input, shape index: {}]   ;;  %s537_s2 = inlined_call_operand.vmem [shape: f32[1,64], index: 2, kind: input, shape index: {}]   ;;  %s538_s3 = inlined_call_operand.vmem [shape: bf16[64,32], index: 3, kind: input, shape index: {}]   ;;  %s539_s4 = inlined_call_operand.hbm [shape: f32[1,32], index: 4, kind: input, shape index: {}]   ;;  %s540_s5 = inlined_call_operand.vmem [shape: bf16[32,128], index: 5, kind: input, shape index: {}]   ;;  %s541_s6 = inlined_call_operand.vmem [shape: f32[1,128], index: 6, kind: input, shape index: {}]   ;;  %s542_s7 = inlined_call_operand.vmem [shape: bf16[16,128], index: 7, kind: input, shape index: {}]   ;;  %s543_s8 = inlined_call_operand.hbm [shape: bf16[16,128], index: 8, kind: output, shape index: {}]  }
   0x1   :  { %14 = vsyncpa [#allocation4], 0  ;;  %s434_s27 = smov [#allocation2]  }
   0x2   :  { %s29_s28 = sshll.u32 %s434_s27, 4  ;;  %s30_s28 = int_to_ptr.vmem [resolvable:$true] %s29_s28 }
   0x3   :  { %s398_s29 = scalar_lea.vmem %s30_s28, 16  ;;  %s402_s30 = scalar_lea.vmem %s30_s28, 32 }
   0x4   :  { %p399_p0 = scmp.ne.s32.totalorder %s30_s28, %s398_s29  ;;  %p403_p1 = scmp.lt.s32.totalorder %s30_s28, %s30_s28 }
   0x5   :  { %p404_p2 = scmp.lt.s32.totalorder %s402_s30, %s398_s29 }
   0x7   :  { %p405_p3 = por %p404_p2, %p403_p1 }
   0x9   :  { %p406_p4 = pnand %p405_p3, %p399_p0 }
   0xb   :  { %409 = shalt.err (!%p406_p4)
}
   0xc   :  { %32 = dma.hbm_to_vmem [thread:$0]  %s539_s4, 16, %s30_s28, [#allocation3]  }
   0xd   :  { %430 = dma.done.wait [#allocation3], 16  }
   0xe   :  { %431 = vsyncadd [#allocation3], 4294967280  ;;  %v435_v0 = vmov 0.0   ;;  %vm436_vm0 = vmmov 0   ;;  %v382_v1 = vld [vmem:[%s536_s1 + $0x8] sm:$0xff]   ;;  %v383_v2 = vld [vmem:[%s536_s1] sm:$0xff]  }
   0xf   :  { %348 = vmatprep.subr.bf16.mxu0 %v435_v0  ;;  %352 = vmatprep.mubr.msk.bf16.mxu0 %vm436_vm0, %v435_v0  ;;  %v43_v3 = vld [vmem:[%s535_s0] sm:$0xff]  ;;  %v44_v4 = vld [vmem:[%s535_s0 + $0x8] sm:$0xff]  ;;  %vm69_vm1 = vcmask 261120   ;;  %v384_v5 = vld [vmem:[%s538_s3 + $0x18] sm:$0xff]   ;;  %vm156_vm2 = vcmask 523264   ;;  %s437_s9 = smov [#allocation5]  }
  0x10   :  { %356 = vmatprep.subr.bf16.mxu1 %v435_v0  ;;  %364 = vmatprep.mubr.msk.bf16.mxu1 %vm436_vm0, %v435_v0  ;;  %v45_v6 = vpack.c.bf16 %v44_v4, %v43_v3  ;;  %v385_v7 = vld [vmem:[%s538_s3 + $0x10] sm:$0xff]   ;;  %v386_v8 = vld [vmem:[%s538_s3 + $0x8] sm:$0xff]   ;;  %v387_v9 = vld [vmem:[%s538_s3] sm:$0xff]   ;;  %s296_s10 = sshll.u32 %s437_s9, 4  ;;  %s297_s10 = int_to_ptr.vmem [resolvable:$true] %s296_s10 }
  0x11   :  { %349 = vmatpush3.bf16.msra.mxu0 %v382_v1  ;;  %357 = vmatpush3.bf16.msra.mxu1 %v384_v5  ;;  %v308_v10 = vld [vmem:[%s537_s2] ss:$0 sm:$0xff]  ;;  %v388_v20 = vld [vmem:[%s540_s5 + $0x8] sm:$0xff]   ;;  %p415_p6 = scmp.lt.s32.totalorder %s297_s10, %s297_s10 }
  0x12   :  { %350 = vmatprep.subr.bf16.mxu0 %v435_v0  ;;  %358 = vmatprep.subr.bf16.mxu1 %v435_v0  ;;  %v389_v21 = vld [vmem:[%s540_s5] sm:$0xff]  }
  0x13   :  { %v312_v22 = vld [vmem:[#allocation2] ss:$0 sm:$0xff] }
  0x14   :  { %v329_v32 = vld [vmem:[%s542_s7] sm:$0xff]   ;;  %s410_s7 = scalar_lea.vmem %s297_s10, 128 }
  0x15   :  { %351 = vmatpush3.bf16.msra.mxu0 %v383_v2  ;;  %359 = vmatpush3.bf16.msra.mxu1 %v385_v7  ;;  %v330_v33 = vunpack.c.l.bf16 %v329_v32  ;;  %v331_v34 = vunpack.c.h.bf16 %v329_v32  ;;  %v318_v37 = vld [vmem:[%s541_s6] ss:$0 sm:$0xff]  ;;  %p411_p5 = scmp.ne.s32.totalorder %s297_s10, %s410_s7  ;;  %p416_p7 = scmp.lt.s32.totalorder %s410_s7, %s410_s7 }
  0x16   :  { %368 = vmatprep.subr.bf16.mxu0 %v435_v0  ;;  %360 = vmatprep.subr.bf16.mxu1 %v435_v0 }
  0x17   :  { %v322_v35 = vadd.f32 -1.0, %v330_v33  ;;  %v323_v36 = vadd.f32 -1.0, %v331_v34  ;;  %p417_p8 = por %p416_p7, %p415_p6 }
  0x18   :  { %353 = vmatmul.mubr.msk.bf16.vlgmr.msra.gmra.mxu0 %vm69_vm1, %v45_v6 }
  0x19   :  { %372 = vmatprep.mubr.msk.bf16.mxu0 %vm436_vm0, %v435_v0  ;;  %361 = vmatpush3.bf16.msra.mxu1 %v386_v8  ;;  %v277_v41 = vmul.f32 1e+09, %v322_v35  ;;  %v278_v42 = vmul.f32 1e+09, %v323_v36  ;;  %p418_p9 = pnand %p417_p8, %p411_p5 }
  0x1a   :  { %362 = vmatprep.subr.bf16.mxu1 %v435_v0  ;;  %369 = vmatpush3.bf16.msra.mxu0 %v388_v20 }
  0x1b   :  { %370 = vmatprep.subr.bf16.mxu0 %v435_v0 }
  0x1d   :  { %363 = vmatpush3.bf16.msra.mxu1 %v387_v9 }
  0x1e   :  { %371 = vmatpush3.bf16.msra.mxu0 %v389_v21 }
  0xd8   :  { %v107_v11 = vpop.f32.mrf.mxu0 }
  0xd9   :  { %v108_v13 = vadd.f32 %v308_v10, %v107_v11 }
  0xda   :  { %v354_v12 = vpop.f32.mrf.mxu0 }
  0xdb   :  { %v114_v17 = vmax.f32 %v108_v13, 0.0 }
  0xdc   :  { %v110_v14 = vpop.f32.mrf.mxu0 }
  0xdd   :  { %v111_v15 = vadd.f32 %v308_v10, %v110_v14 }
  0xde   :  { %v355_v16 = vpop.f32.mrf.mxu0 }
  0xdf   :  { %v115_v18 = vmax.f32 %v111_v15, 0.0 }
  0xe1   :  { %v116_v19 = vpack.c.bf16 %v115_v18, %v114_v17 }
  0xe3   :  { %365 = vmatmul.mubr.msk.bf16.vlgmr.msra.gmra.mxu1 %vm156_vm2, %v116_v19 }
 0x1a3   :  { %v194_v23 = vpop.f32.mrf.mxu1 }
 0x1a4   :  { %v195_v25 = vadd.f32 %v312_v22, %v194_v23 }
 0x1a5   :  { %v366_v24 = vpop.f32.mrf.mxu1 }
 0x1a6   :  { %v201_v29 = vmax.f32 %v195_v25, 0.0 }
 0x1a7   :  { %v197_v26 = vpop.f32.mrf.mxu1 }
 0x1a8   :  { %v198_v27 = vadd.f32 %v312_v22, %v197_v26 }
 0x1a9   :  { %v367_v28 = vpop.f32.mrf.mxu1 }
 0x1aa   :  { %v202_v30 = vmax.f32 %v198_v27, 0.0 }
 0x1ac   :  { %v203_v31 = vpack.c.bf16 %v202_v30, %v201_v29 }
 0x1ae   :  { %373 = vmatmul.mubr.msk.bf16.vlgmr.msra.gmra.mxu0 %vm69_vm1, %v203_v31 }
 0x26e   :  { %v264_v38 = vpop.f32.mrf.mxu0 }
 0x26f   :  { %v265_v40 = vadd.f32 %v318_v37, %v264_v38 }
 0x270   :  { %v374_v39 = vpop.f32.mrf.mxu0 }
 0x271   :  { %v279_v46 = vadd.f32 %v277_v41, %v265_v40 }
 0x272   :  { %v267_v43 = vpop.f32.mrf.mxu0 }
 0x273   :  { %v268_v44 = vadd.f32 %v318_v37, %v267_v43 }
 0x274   :  { %v375_v45 = vpop.f32.mrf.mxu0 }
 0x275   :  { %v280_v47 = vadd.f32 %v278_v42, %v268_v44 }
 0x277   :  { %v335_v48 = vpack.c.bf16 %v280_v47, %v279_v46 }
 0x279   :  { %336 = vst [vmem:[#allocation5] sm:$0xff] %v335_v48  }
 0x27a   :  { %421 = shalt.err (!%p418_p9)
}
 0x27b   :  { %s438_s6 = smov 64   ;;  %s439_s11 = smov 4  }
 0x27c   :  { %302 = dma.vmem_to_hbm [thread:$0]  %s297_s10, 128, %s543_s8, [#allocation4], %s438_s6, %s438_s6, %s439_s11  }
 0x27d   :  { %432 = dma.done.wait [#allocation4], 128  }
 0x27e   :  { %433 = vsyncadd [#allocation4], 4294967168 }
 0x27f   :  { %306 = vsyncpa [#allocation3], 1 }
 0x280   :  { %307 = vsyncpa [#allocation4], 1 }

</bundles_post_ra>
